<compile_context>
chip_gen: v5e
topology: v5e:2x2
jax: 0.10.0
libtpu: 0.0.40
codegen_flags: <defaults>
</compile_context>

<pallas_src>
import functools

import jax
import jax.numpy as jnp
from jax.experimental import pallas as pl
from jax.experimental.pallas import tpu as pltpu

BN_EPS = 1e-5
LANE = 128


def _round_up(x, m):
    return (x + m - 1) // m * m


# ---------------------------------------------------------------------------
# Pass 1: conv-as-matmul + per-tile BN partial stats.  Fully parallel over M.
# ---------------------------------------------------------------------------
def _conv_stats_kernel(p_ref, w_ref, y_ref, sum_ref, sq_ref):
    # (tm, K) @ (K, Cp) -> (tm, Cp) on the MXU, f32 accumulation.
    acc = jnp.dot(p_ref[...], w_ref[...], preferred_element_type=jnp.float32)
    y_ref[...] = acc
    s = jnp.sum(acc, axis=0, keepdims=True)          # (1, Cp)
    sq = jnp.sum(acc * acc, axis=0, keepdims=True)   # (1, Cp)
    sum_ref[...] = s[None, :, :]                     # (1, 1, Cp)
    sq_ref[...] = sq[None, :, :]                     # (1, 1, Cp)


# ---------------------------------------------------------------------------
# Pass 2: BN affine (precomputed per-channel scale/shift) + ReLU.
# ---------------------------------------------------------------------------
def _bn_relu_kernel(y_ref, scale_ref, shift_ref, o_ref):
    y = y_ref[...] * scale_ref[...] + shift_ref[...]
    o_ref[...] = jnp.maximum(y, 0.0).astype(o_ref.dtype)


def _im2col_dilated(x_nchw, k, dilation, compute_dtype):
    """NCHW -> (M, k*k*Cin) dilated patches; one transpose, one pad, one concat."""
    N, C, H, W = x_nchw.shape
    pad = dilation
    x_nhwc = jnp.transpose(x_nchw.astype(compute_dtype), (0, 2, 3, 1))
    xp = jnp.pad(x_nhwc, ((0, 0), (pad, pad), (pad, pad), (0, 0)))
    taps = []
    for kh in range(k):
        for kw in range(k):
            taps.append(xp[:, kh * dilation:kh * dilation + H,
                           kw * dilation:kw * dilation + W, :])
    patches = jnp.concatenate(taps, axis=-1)         # (N, H, W, k*k*C)
    return patches.reshape(N * H * W, k * k * C)


@functools.partial(jax.jit, static_argnames=("dilation", "compute_dtype", "tm"))
def dilated_conv_forward(x, conv_w, conv_b, bn_gamma, bn_beta,
                         dilation=2, compute_dtype=jnp.bfloat16, tm=512):
    """x: (N, Cin, H, W).  conv_w: (Cout, Cin, 3, 3).  Returns (N, Cout, H, W) f32."""
    del conv_b  # per-channel constant: exactly cancelled by BN mean-centering
    N, Cin, H, W = x.shape
    Cout, _, k, _ = conv_w.shape
    K = k * k * Cin
    M = N * H * W

    Cp = _round_up(Cout, LANE)          # lane-dense output / MXU N dim
    M_pad = _round_up(M, tm)
    n_tiles = M_pad // tm

    patches = _im2col_dilated(x, k, dilation, compute_dtype)        # (M, K)
    if M_pad != M:
        # zero rows -> zero conv output (no bias), so BN stats stay exact
        patches = jnp.pad(patches, ((0, M_pad - M), (0, 0)))

    # (Cout, Cin, kh, kw) -> (kh, kw, Cin, Cout) -> (K, Cout), padded to Cp lanes.
    w2 = conv_w.transpose(2, 3, 1, 0).reshape(K, Cout).astype(compute_dtype)
    w2 = jnp.pad(w2, ((0, 0), (0, Cp - Cout)))

    cparams = pltpu.CompilerParams(
        dimension_semantics=("parallel",),
        vmem_limit_bytes=32 * 1024 * 1024,
    )

    # ---- pass 1: tiled conv matmul + per-tile BN partials ----
    y_flat, tsum, tsq = pl.pallas_call(
        _conv_stats_kernel,
        out_shape=(
            jax.ShapeDtypeStruct((M_pad, Cp), jnp.float32),
            jax.ShapeDtypeStruct((n_tiles, 1, Cp), jnp.float32),
            jax.ShapeDtypeStruct((n_tiles, 1, Cp), jnp.float32),
        ),
        grid=(n_tiles,),
        in_specs=[
            pl.BlockSpec((tm, K), lambda i: (i, 0)),
            pl.BlockSpec((K, Cp), lambda i: (0, 0)),
        ],
        out_specs=(
            pl.BlockSpec((tm, Cp), lambda i: (i, 0)),
            pl.BlockSpec((1, 1, Cp), lambda i: (i, 0, 0)),
            pl.BlockSpec((1, 1, Cp), lambda i: (i, 0, 0)),
        ),
        compiler_params=cparams,
    )(patches, w2)

    # ---- tiny cross-tile reduction + BN folding (plain JAX, f32) ----
    total_sum = jnp.sum(tsum[:, 0, :], axis=0)
    total_sq = jnp.sum(tsq[:, 0, :], axis=0)
    inv_m = 1.0 / float(M)                       # true pixel count (pad rows = 0)
    mean = total_sum * inv_m
    var = total_sq * inv_m - mean * mean
    inv_std = jax.lax.rsqrt(var + BN_EPS)
    gamma_p = jnp.pad(bn_gamma.astype(jnp.float32), (0, Cp - Cout))
    beta_p = jnp.pad(bn_beta.astype(jnp.float32), (0, Cp - Cout))
    scale = (gamma_p * inv_std).reshape(1, Cp)
    shift = (beta_p - mean * gamma_p * inv_std).reshape(1, Cp)

    # ---- pass 2: BN apply + ReLU (fully parallel over M tiles) ----
    out_flat = pl.pallas_call(
        _bn_relu_kernel,
        out_shape=jax.ShapeDtypeStruct((M_pad, Cp), jnp.float32),
        grid=(n_tiles,),
        in_specs=[
            pl.BlockSpec((tm, Cp), lambda i: (i, 0)),
            pl.BlockSpec((1, Cp), lambda i: (0, 0)),
            pl.BlockSpec((1, Cp), lambda i: (0, 0)),
        ],
        out_specs=pl.BlockSpec((tm, Cp), lambda i: (i, 0)),
        compiler_params=cparams,
    )(y_flat, scale, shift)

    out = out_flat[:M, :Cout].reshape(N, H, W, Cout)
    return jnp.transpose(out, (0, 3, 1, 2))      # back to NCHW (PyTorch layout)


def _reference(x, conv_w, conv_b, bn_gamma, bn_beta, dilation=2,
               compute_dtype=jnp.float32):
    """Pure-JAX reference mirroring the PyTorch forward (training-mode BN)."""
    y = jax.lax.conv_general_dilated(
        x.astype(compute_dtype), conv_w.astype(compute_dtype),
        window_strides=(1, 1),
        padding=((dilation, dilation), (dilation, dilation)),
        rhs_dilation=(dilation, dilation),
        dimension_numbers=("NCHW", "OIHW", "NCHW"),
        preferred_element_type=jnp.float32,
    ) + conv_b.reshape(1, -1, 1, 1)
    mean = jnp.mean(y, axis=(0, 2, 3), keepdims=True)
    var = jnp.mean((y - mean) ** 2, axis=(0, 2, 3), keepdims=True)
    y = (y - mean) * jax.lax.rsqrt(var + BN_EPS)
    y = y * bn_gamma.reshape(1, -1, 1, 1) + bn_beta.reshape(1, -1, 1, 1)
    return jnp.maximum(y, 0.0)


if __name__ == "__main__":
    key = jax.random.PRNGKey(0)
    kx, kw, kb, kx2 = jax.random.split(key, 4)

    N, Cin, Cout = 2, 4, 8
    dilation = 2

    fan_in = Cin * 3 * 3
    conv_w = jax.random.normal(kw, (Cout, Cin, 3, 3), dtype=jnp.float32) / jnp.sqrt(fan_in)
    conv_b = 0.01 * jax.random.normal(kb, (Cout,), dtype=jnp.float32)
    bn_gamma = jnp.ones((Cout,), dtype=jnp.float32)
    bn_beta = jnp.zeros((Cout,), dtype=jnp.float32)

    # --- test 1: f32 compute path, small shape (single M tile), strict check ---
    H = W = 16
    x = jax.random.normal(kx, (N, Cin, H, W), dtype=jnp.float32)
    out = dilated_conv_forward(x, conv_w, conv_b, bn_gamma, bn_beta,
                               dilation=dilation, compute_dtype=jnp.float32)
    out = jax.block_until_ready(out)
    ref = _reference(x, conv_w, conv_b, bn_gamma, bn_beta, dilation=dilation)
    assert out.shape == (N, Cout, H, W)
    assert jnp.allclose(out, ref, atol=1e-3, rtol=1e-3), \
        float(jnp.max(jnp.abs(out - ref)))

    # --- test 2: bf16 compute path, multi-tile grid (M = 2048 -> 4 tiles) ---
    H2 = W2 = 32
    x2 = jax.random.normal(kx2, (N, Cin, H2, W2), dtype=jnp.float32)
    out2 = dilated_conv_forward(x2, conv_w, conv_b, bn_gamma, bn_beta,
                                dilation=dilation, compute_dtype=jnp.bfloat16)
    out2 = jax.block_until_ready(out2)
    ref2 = _reference(x2, conv_w, conv_b, bn_gamma, bn_beta, dilation=dilation,
                      compute_dtype=jnp.bfloat16)
    assert out2.shape == (N, Cout, H2, W2)
    assert jnp.allclose(out2, ref2, atol=1e-2, rtol=1e-2), \
        float(jnp.max(jnp.abs(out2 - ref2)))

    print("KERNEL_OK")
</pallas_src>

<mosaic_0001>
module attributes {stable_mosaic.version = 11 : i64} {
  func.func @_conv_stats_kernel(%arg0: i32, %arg1: memref<512x36xf32, #tpu.memory_space<vmem>>, %arg2: memref<36x128xf32, #tpu.memory_space<vmem>>, %arg3: memref<512x128xf32, #tpu.memory_space<vmem>>, %arg4: memref<1x1x128xf32, #tpu.memory_space<vmem>>, %arg5: memref<1x1x128xf32, #tpu.memory_space<vmem>>) attributes {dimension_semantics = [#tpu.dimension_semantics<parallel>], iteration_bounds = array<i64: 1>, scalar_prefetch = 0 : i64, scratch_operands = 0 : i64, tpu.core_type = #tpu.core_type<tc>, window_params = [{transform_indices = @transform_0, window_bounds = array<i64: 512, 36>}, {pipeline_mode = #tpu.pipeline_mode<synchronous>, transform_indices = @transform_1, window_bounds = array<i64: 36, 128>}, {transform_indices = @transform_2, window_bounds = array<i64: 512, 128>}, {transform_indices = @transform_3, window_bounds = array<i64: 1, 1, 128>}, {transform_indices = @transform_4, window_bounds = array<i64: 1, 1, 128>}]} {
    %c0 = arith.constant 0 : index
    %c0_0 = arith.constant 0 : index
    %0 = vector.load %arg1[%c0, %c0_0] : memref<512x36xf32, #tpu.memory_space<vmem>>, vector<512x36xf32>
    %c0_1 = arith.constant 0 : index
    %c0_2 = arith.constant 0 : index
    %1 = vector.load %arg2[%c0_1, %c0_2] : memref<36x128xf32, #tpu.memory_space<vmem>>, vector<36x128xf32>
    %cst = arith.constant dense<0.000000e+00> : vector<512x128xf32>
    %2 = tpu.matmul %0, %1, %cst {dimension_numbers = #tpu.dot_dimension_numbers<[1], [0], [0], [1], [0, 0, 1, 1], [], []>} : vector<512x36xf32>, vector<36x128xf32>, vector<512x128xf32> -> vector<512x128xf32>
    %c0_3 = arith.constant 0 : index
    %c0_4 = arith.constant 0 : index
    %3 = vector.load %arg3[%c0_3, %c0_4] : memref<512x128xf32, #tpu.memory_space<vmem>>, vector<512x128xf32>
    tpu.vector_store %arg3[%c0_3, %c0_4], %2 {strides = array<i32>} : memref<512x128xf32, #tpu.memory_space<vmem>>, vector<512x128xf32>,
    %cst_5 = arith.constant dense<0.000000e+00> : vector<128xf32>
    %4 = vector.multi_reduction <add>, %2, %cst_5 [0] : vector<512x128xf32> to vector<128xf32>
    %5 = vector.shape_cast %4 : vector<128xf32> to vector<1x128xf32>
    %6 = arith.mulf %2, %2 : vector<512x128xf32>
    %cst_6 = arith.constant dense<0.000000e+00> : vector<128xf32>
    %7 = vector.multi_reduction <add>, %6, %cst_6 [0] : vector<512x128xf32> to vector<128xf32>
    %8 = vector.shape_cast %7 : vector<128xf32> to vector<1x128xf32>
    %9 = vector.shape_cast %5 : vector<1x128xf32> to vector<1x1x128xf32>
    %c0_7 = arith.constant 0 : index
    %c0_8 = arith.constant 0 : index
    %c0_9 = arith.constant 0 : index
    %10 = vector.load %arg4[%c0_7, %c0_8, %c0_9] : memref<1x1x128xf32, #tpu.memory_space<vmem>>, vector<1x1x128xf32>
    tpu.vector_store %arg4[%c0_7, %c0_8, %c0_9], %9 {strides = array<i32>} : memref<1x1x128xf32, #tpu.memory_space<vmem>>, vector<1x1x128xf32>,
    %11 = vector.shape_cast %8 : vector<1x128xf32> to vector<1x1x128xf32>
    %c0_10 = arith.constant 0 : index
    %c0_11 = arith.constant 0 : index
    %c0_12 = arith.constant 0 : index
    %12 = vector.load %arg5[%c0_10, %c0_11, %c0_12] : memref<1x1x128xf32, #tpu.memory_space<vmem>>, vector<1x1x128xf32>
    tpu.vector_store %arg5[%c0_10, %c0_11, %c0_12], %11 {strides = array<i32>} : memref<1x1x128xf32, #tpu.memory_space<vmem>>, vector<1x1x128xf32>,
    return
  }
  func.func @transform_0(%arg0: i32) -> (i32, i32) {
    %c0_i32 = arith.constant 0 : i32
    %c0_i32_0 = arith.constant 0 : i32
    return %arg0, %c0_i32 : i32, i32
  }
  func.func @transform_1(%arg0: i32) -> (i32, i32) {
    %c0_i32 = arith.constant 0 : i32
    %c0_i32_0 = arith.constant 0 : i32
    %c0_i32_1 = arith.constant 0 : i32
    return %c0_i32, %c0_i32_0 : i32, i32
  }
  func.func @transform_2(%arg0: i32) -> (i32, i32) {
    %c0_i32 = arith.constant 0 : i32
    %c0_i32_0 = arith.constant 0 : i32
    return %arg0, %c0_i32 : i32, i32
  }
  func.func @transform_3(%arg0: i32) -> (i32, i32, i32) {
    %c0_i32 = arith.constant 0 : i32
    %c0_i32_0 = arith.constant 0 : i32
    %c0_i32_1 = arith.constant 0 : i32
    return %arg0, %c0_i32, %c0_i32_0 : i32, i32, i32
  }
  func.func @transform_4(%arg0: i32) -> (i32, i32, i32) {
    %c0_i32 = arith.constant 0 : i32
    %c0_i32_0 = arith.constant 0 : i32
    %c0_i32_1 = arith.constant 0 : i32
    return %arg0, %c0_i32, %c0_i32_0 : i32, i32, i32
  }
}

module attributes {stable_mosaic.version = 11 : i64} {
  func.func @_bn_relu_kernel(%arg0: i32, %arg1: memref<512x128xf32, #tpu.memory_space<vmem>>, %arg2: memref<1x128xf32, #tpu.memory_space<vmem>>, %arg3: memref<1x128xf32, #tpu.memory_space<vmem>>, %arg4: memref<512x128xf32, #tpu.memory_space<vmem>>) attributes {dimension_semantics = [#tpu.dimension_semantics<parallel>], iteration_bounds = array<i64: 1>, scalar_prefetch = 0 : i64, scratch_operands = 0 : i64, tpu.core_type = #tpu.core_type<tc>, window_params = [{transform_indices = @transform_0, window_bounds = array<i64: 512, 128>}, {pipeline_mode = #tpu.pipeline_mode<synchronous>, transform_indices = @transform_1, window_bounds = array<i64: 1, 128>}, {pipeline_mode = #tpu.pipeline_mode<synchronous>, transform_indices = @transform_2, window_bounds = array<i64: 1, 128>}, {transform_indices = @transform_3, window_bounds = array<i64: 512, 128>}]} {
    %c0 = arith.constant 0 : index
    %c0_0 = arith.constant 0 : index
    %0 = vector.load %arg1[%c0, %c0_0] : memref<512x128xf32, #tpu.memory_space<vmem>>, vector<512x128xf32>
    %c0_1 = arith.constant 0 : index
    %c0_2 = arith.constant 0 : index
    %1 = vector.load %arg2[%c0_1, %c0_2] : memref<1x128xf32, #tpu.memory_space<vmem>>, vector<1x128xf32>
    %2 = vector.broadcast %1 : vector<1x128xf32> to vector<512x128xf32>
    %3 = arith.mulf %0, %2 : vector<512x128xf32>
    %c0_3 = arith.constant 0 : index
    %c0_4 = arith.constant 0 : index
    %4 = vector.load %arg3[%c0_3, %c0_4] : memref<1x128xf32, #tpu.memory_space<vmem>>, vector<1x128xf32>
    %5 = vector.broadcast %4 : vector<1x128xf32> to vector<512x128xf32>
    %6 = arith.addf %3, %5 : vector<512x128xf32>
    %cst = arith.constant 0.000000e+00 : f32
    %7 = vector.broadcast %cst : f32 to vector<512x128xf32>
    %8 = arith.maximumf %6, %7 : vector<512x128xf32>
    %c0_5 = arith.constant 0 : index
    %c0_6 = arith.constant 0 : index
    %9 = vector.load %arg4[%c0_5, %c0_6] : memref<512x128xf32, #tpu.memory_space<vmem>>, vector<512x128xf32>
    tpu.vector_store %arg4[%c0_5, %c0_6], %8 {strides = array<i32>} : memref<512x128xf32, #tpu.memory_space<vmem>>, vector<512x128xf32>,
    return
  }
  func.func @transform_0(%arg0: i32) -> (i32, i32) {
    %c0_i32 = arith.constant 0 : i32
    %c0_i32_0 = arith.constant 0 : i32
    return %arg0, %c0_i32 : i32, i32
  }
  func.func @transform_1(%arg0: i32) -> (i32, i32) {
    %c0_i32 = arith.constant 0 : i32
    %c0_i32_0 = arith.constant 0 : i32
    %c0_i32_1 = arith.constant 0 : i32
    return %c0_i32, %c0_i32_0 : i32, i32
  }
  func.func @transform_2(%arg0: i32) -> (i32, i32) {
    %c0_i32 = arith.constant 0 : i32
    %c0_i32_0 = arith.constant 0 : i32
    %c0_i32_1 = arith.constant 0 : i32
    return %c0_i32, %c0_i32_0 : i32, i32
  }
  func.func @transform_3(%arg0: i32) -> (i32, i32) {
    %c0_i32 = arith.constant 0 : i32
    %c0_i32_0 = arith.constant 0 : i32
    return %arg0, %c0_i32 : i32, i32
  }
}

</mosaic_0001>

<bundles_post_ra>
// kernel: dilated_conv_forward.3
= control target key start
LH: loop header
LB: loop body
LE: loop exit
PB: predicated region body
PF: predicated region fallthrough
CT: control target
= control target key end

     0   :  { %s893_s0 = inlined_call_operand.vmem [shape: f32[512,128], index: 0, kind: input, shape index: {}]   ;;  %s894_s1 = inlined_call_operand.vmem [shape: f32[1,128], index: 1, kind: input, shape index: {}]   ;;  %s895_s2 = inlined_call_operand.vmem [shape: f32[1,128], index: 2, kind: input, shape index: {}]   ;;  %s896_s3 = inlined_call_operand.vmem [shape: f32[512,128], index: 3, kind: output, shape index: {}]  }
   0x1   :  { %v14_v0 = vld [vmem:[%s893_s0] sm:$0xff]  ;;  %v15_v3 = vld [vmem:[%s893_s0 + $0x8] sm:$0xff]  ;;  %v16_v6 = vld [vmem:[%s893_s0 + $0x10] sm:$0xff] }
   0x2   :  { %v374_v1 = vld [vmem:[%s894_s1] ss:$0 sm:$0xff]  ;;  %v17_v7 = vld [vmem:[%s893_s0 + $0x18] sm:$0xff]  ;;  %v19_v12 = vld [vmem:[%s893_s0 + $0x28] sm:$0xff] }
   0x3   :  { %v379_v2 = vld [vmem:[%s895_s2] ss:$0 sm:$0xff]  ;;  %v82_v4 = vmul.f32 %v374_v1, %v14_v0  ;;  %v83_v5 = vmul.f32 %v374_v1, %v15_v3  ;;  %v84_v9 = vmul.f32 %v374_v1, %v16_v6  ;;  %v85_v10 = vmul.f32 %v374_v1, %v17_v7  ;;  %v20_v13 = vld [vmem:[%s893_s0 + $0x30] sm:$0xff]  ;;  %v21_v14 = vld [vmem:[%s893_s0 + $0x38] sm:$0xff] }
   0x4   :  { %v18_v8 = vld [vmem:[%s893_s0 + $0x20] sm:$0xff]  ;;  %v87_v17 = vmul.f32 %v374_v1, %v19_v12  ;;  %v88_v18 = vmul.f32 %v374_v1, %v20_v13  ;;  %v89_v22 = vmul.f32 %v374_v1, %v21_v14  ;;  %v23_v24 = vld [vmem:[%s893_s0 + $0x48] sm:$0xff]  ;;  %v24_v29 = vld [vmem:[%s893_s0 + $0x50] sm:$0xff] }
   0x5   :  { %v86_v11 = vmul.f32 %v374_v1, %v18_v8  ;;  %v150_v15 = vadd.f32 %v379_v2, %v82_v4  ;;  %v151_v16 = vadd.f32 %v379_v2, %v83_v5  ;;  %v152_v19 = vadd.f32 %v379_v2, %v84_v9  ;;  %v22_v23 = vld [vmem:[%s893_s0 + $0x40] sm:$0xff]  ;;  %v25_v30 = vld [vmem:[%s893_s0 + $0x58] sm:$0xff]  ;;  %v27_v35 = vld [vmem:[%s893_s0 + $0x68] sm:$0xff] }
   0x6   :  { %v153_v20 = vadd.f32 %v379_v2, %v85_v10  ;;  %v155_v27 = vadd.f32 %v379_v2, %v87_v17  ;;  %v156_v28 = vadd.f32 %v379_v2, %v88_v18  ;;  %v26_v31 = vld [vmem:[%s893_s0 + $0x60] sm:$0xff]  ;;  %v157_v34 = vadd.f32 %v379_v2, %v89_v22  ;;  %v28_v36 = vld [vmem:[%s893_s0 + $0x70] sm:$0xff]  ;;  %v29_v41 = vld [vmem:[%s893_s0 + $0x78] sm:$0xff] }
   0x7   :  { %v154_v21 = vadd.f32 %v379_v2, %v86_v11  ;;  %v214_v25 = vmax.f32 %v150_v15, 0.0  ;;  %v215_v26 = vmax.f32 %v151_v16, 0.0  ;;  %v216_v32 = vmax.f32 %v152_v19, 0.0  ;;  %v30_v54 = vld [vmem:[%s893_s0 + $0x80] sm:$0xff]  ;;  %v31_v55 = vld [vmem:[%s893_s0 + $0x88] sm:$0xff]  ;;  %v32_v58 = vld [vmem:[%s893_s0 + $0x90] sm:$0xff] }
   0x8   :  { %v217_v33 = vmax.f32 %v153_v20, 0.0  ;;  %v219_v38 = vmax.f32 %v155_v27, 0.0  ;;  %v90_v39 = vmul.f32 %v374_v1, %v22_v23  ;;  %v91_v40 = vmul.f32 %v374_v1, %v23_v24  ;;  %v33_v59 = vld [vmem:[%s893_s0 + $0x98] sm:$0xff]  ;;  %v34_v62 = vld [vmem:[%s893_s0 + $0xa0] sm:$0xff]  ;;  %v35_v5 = vld [vmem:[%s893_s0 + $0xa8] sm:$0xff] }
   0x9   :  { %278 = vst [vmem:[%s896_s3] sm:$0xff] %v214_v25  ;;  %v218_v37 = vmax.f32 %v154_v21, 0.0  ;;  %v220_v42 = vmax.f32 %v156_v28, 0.0  ;;  %v92_v43 = vmul.f32 %v374_v1, %v24_v29  ;;  %v93_v44 = vmul.f32 %v374_v1, %v25_v30  ;;  %v36_v10 = vld [vmem:[%s893_s0 + $0xb0] sm:$0xff]  ;;  %v37_v14 = vld [vmem:[%s893_s0 + $0xb8] sm:$0xff]  ;;  %v38_v18 = vld [vmem:[%s893_s0 + $0xc0] sm:$0xff] }
   0xa   :  { %279 = vst [vmem:[%s896_s3 + $0x8] sm:$0xff] %v215_v26  ;;  %v94_v45 = vmul.f32 %v374_v1, %v26_v31  ;;  %v158_v46 = vadd.f32 %v379_v2, %v90_v39  ;;  %v159_v47 = vadd.f32 %v379_v2, %v91_v40  ;;  %v95_v48 = vmul.f32 %v374_v1, %v27_v35  ;;  %v39_v22 = vld [vmem:[%s893_s0 + $0xc8] sm:$0xff]  ;;  %v40_v26 = vld [vmem:[%s893_s0 + $0xd0] sm:$0xff]  ;;  %v41_v30 = vld [vmem:[%s893_s0 + $0xd8] sm:$0xff] }
   0xb   :  { %280 = vst [vmem:[%s896_s3 + $0x10] sm:$0xff] %v216_v32  ;;  %v96_v49 = vmul.f32 %v374_v1, %v28_v36  ;;  %v221_v50 = vmax.f32 %v157_v34, 0.0  ;;  %v160_v51 = vadd.f32 %v379_v2, %v92_v43  ;;  %v161_v52 = vadd.f32 %v379_v2, %v93_v44  ;;  %v42_v34 = vld [vmem:[%s893_s0 + $0xe0] sm:$0xff] }
   0xc   :  { %281 = vst [vmem:[%s896_s3 + $0x18] sm:$0xff] %v217_v33  ;;  %v97_v53 = vmul.f32 %v374_v1, %v29_v41  ;;  %v222_v56 = vmax.f32 %v158_v46, 0.0  ;;  %v162_v57 = vadd.f32 %v379_v2, %v94_v45  ;;  %v223_v60 = vmax.f32 %v159_v47, 0.0  ;;  %v45_v46 = vld [vmem:[%s893_s0 + $0xf8] sm:$0xff] }
   0xd   :  { %282 = vst [vmem:[%s896_s3 + $0x20] sm:$0xff] %v218_v37  ;;  %v163_v61 = vadd.f32 %v379_v2, %v95_v48  ;;  %v224_v63 = vmax.f32 %v160_v51, 0.0  ;;  %v164_v0 = vadd.f32 %v379_v2, %v96_v49  ;;  %v98_v3 = vmul.f32 %v374_v1, %v30_v54  ;;  %v47_v54 = vld [vmem:[%s893_s0 + $0x108] sm:$0xff] }
   0xe   :  { %283 = vst [vmem:[%s896_s3 + $0x28] sm:$0xff] %v219_v38  ;;  %v99_v4 = vmul.f32 %v374_v1, %v31_v55  ;;  %v225_v6 = vmax.f32 %v161_v52, 0.0  ;;  %v165_v7 = vadd.f32 %v379_v2, %v97_v53  ;;  %v100_v8 = vmul.f32 %v374_v1, %v32_v58  ;;  %v43_v38 = vld [vmem:[%s893_s0 + $0xe8] sm:$0xff]  ;;  %v48_v58 = vld [vmem:[%s893_s0 + $0x110] sm:$0xff] }
   0xf   :  { %284 = vst [vmem:[%s896_s3 + $0x30] sm:$0xff] %v220_v42  ;;  %v101_v9 = vmul.f32 %v374_v1, %v33_v59  ;;  %v226_v11 = vmax.f32 %v162_v57, 0.0  ;;  %v166_v12 = vadd.f32 %v379_v2, %v98_v3  ;;  %v102_v13 = vmul.f32 %v374_v1, %v34_v62  ;;  %v44_v42 = vld [vmem:[%s893_s0 + $0xf0] sm:$0xff]  ;;  %v49_v62 = vld [vmem:[%s893_s0 + $0x118] sm:$0xff] }
  0x10   :  { %285 = vst [vmem:[%s896_s3 + $0x38] sm:$0xff] %v221_v50  ;;  %v227_v15 = vmax.f32 %v163_v61, 0.0  ;;  %v167_v16 = vadd.f32 %v379_v2, %v99_v4  ;;  %v103_v17 = vmul.f32 %v374_v1, %v35_v5  ;;  %v228_v19 = vmax.f32 %v164_v0, 0.0  ;;  %v46_v50 = vld [vmem:[%s893_s0 + $0x100] sm:$0xff] }
  0x11   :  { %286 = vst [vmem:[%s896_s3 + $0x40] sm:$0xff] %v222_v56  ;;  %v168_v20 = vadd.f32 %v379_v2, %v100_v8  ;;  %v104_v21 = vmul.f32 %v374_v1, %v36_v10  ;;  %v229_v23 = vmax.f32 %v165_v7, 0.0  ;;  %v169_v24 = vadd.f32 %v379_v2, %v101_v9  ;;  %v50_v4 = vld [vmem:[%s893_s0 + $0x120] sm:$0xff]  ;;  %v51_v8 = vld [vmem:[%s893_s0 + $0x128] sm:$0xff] }
  0x12   :  { %287 = vst [vmem:[%s896_s3 + $0x48] sm:$0xff] %v223_v60  ;;  %v105_v25 = vmul.f32 %v374_v1, %v37_v14  ;;  %v230_v27 = vmax.f32 %v166_v12, 0.0  ;;  %v170_v28 = vadd.f32 %v379_v2, %v102_v13  ;;  %v106_v29 = vmul.f32 %v374_v1, %v38_v18  ;;  %v52_v12 = vld [vmem:[%s893_s0 + $0x130] sm:$0xff] }
  0x13   :  { %288 = vst [vmem:[%s896_s3 + $0x50] sm:$0xff] %v224_v63  ;;  %v231_v31 = vmax.f32 %v167_v16, 0.0  ;;  %v171_v32 = vadd.f32 %v379_v2, %v103_v17  ;;  %v107_v33 = vmul.f32 %v374_v1, %v39_v22  ;;  %v232_v35 = vmax.f32 %v168_v20, 0.0  ;;  %v53_v16 = vld [vmem:[%s893_s0 + $0x138] sm:$0xff]  ;;  %v54_v20 = vld [vmem:[%s893_s0 + $0x140] sm:$0xff] }
  0x14   :  { %289 = vst [vmem:[%s896_s3 + $0x58] sm:$0xff] %v225_v6  ;;  %v172_v36 = vadd.f32 %v379_v2, %v104_v21  ;;  %v108_v37 = vmul.f32 %v374_v1, %v40_v26  ;;  %v233_v39 = vmax.f32 %v169_v24, 0.0  ;;  %v173_v40 = vadd.f32 %v379_v2, %v105_v25  ;;  %v55_v24 = vld [vmem:[%s893_s0 + $0x148] sm:$0xff] }
  0x15   :  { %290 = vst [vmem:[%s896_s3 + $0x60] sm:$0xff] %v226_v11  ;;  %v109_v41 = vmul.f32 %v374_v1, %v41_v30  ;;  %v234_v43 = vmax.f32 %v170_v28, 0.0  ;;  %v174_v44 = vadd.f32 %v379_v2, %v106_v29  ;;  %v110_v45 = vmul.f32 %v374_v1, %v42_v34  ;;  %v56_v28 = vld [vmem:[%s893_s0 + $0x150] sm:$0xff] }
  0x16   :  { %291 = vst [vmem:[%s896_s3 + $0x68] sm:$0xff] %v227_v15  ;;  %v235_v47 = vmax.f32 %v171_v32, 0.0  ;;  %v175_v48 = vadd.f32 %v379_v2, %v107_v33  ;;  %v111_v49 = vmul.f32 %v374_v1, %v43_v38  ;;  %v236_v51 = vmax.f32 %v172_v36, 0.0  ;;  %v57_v32 = vld [vmem:[%s893_s0 + $0x158] sm:$0xff]  ;;  %v58_v36 = vld [vmem:[%s893_s0 + $0x160] sm:$0xff] }
  0x17   :  { %292 = vst [vmem:[%s896_s3 + $0x70] sm:$0xff] %v228_v19  ;;  %v176_v52 = vadd.f32 %v379_v2, %v108_v37  ;;  %v112_v53 = vmul.f32 %v374_v1, %v44_v42  ;;  %v237_v55 = vmax.f32 %v173_v40, 0.0  ;;  %v177_v56 = vadd.f32 %v379_v2, %v109_v41  ;;  %v59_v40 = vld [vmem:[%s893_s0 + $0x168] sm:$0xff] }
  0x18   :  { %293 = vst [vmem:[%s896_s3 + $0x78] sm:$0xff] %v229_v23  ;;  %v113_v57 = vmul.f32 %v374_v1, %v45_v46  ;;  %v238_v59 = vmax.f32 %v174_v44, 0.0  ;;  %v178_v60 = vadd.f32 %v379_v2, %v110_v45  ;;  %v114_v61 = vmul.f32 %v374_v1, %v46_v50  ;;  %v60_v44 = vld [vmem:[%s893_s0 + $0x170] sm:$0xff] }
  0x19   :  { %294 = vst [vmem:[%s896_s3 + $0x80] sm:$0xff] %v230_v27  ;;  %v239_v63 = vmax.f32 %v175_v48, 0.0  ;;  %v179_v0 = vadd.f32 %v379_v2, %v111_v49  ;;  %v115_v3 = vmul.f32 %v374_v1, %v47_v54  ;;  %v240_v5 = vmax.f32 %v176_v52, 0.0  ;;  %v61_v48 = vld [vmem:[%s893_s0 + $0x178] sm:$0xff]  ;;  %v62_v52 = vld [vmem:[%s893_s0 + $0x180] sm:$0xff] }
  0x1a   :  { %295 = vst [vmem:[%s896_s3 + $0x88] sm:$0xff] %v231_v31  ;;  %v180_v6 = vadd.f32 %v379_v2, %v112_v53  ;;  %v116_v7 = vmul.f32 %v374_v1, %v48_v58  ;;  %v241_v9 = vmax.f32 %v177_v56, 0.0  ;;  %v181_v10 = vadd.f32 %v379_v2, %v113_v57  ;;  %v63_v56 = vld [vmem:[%s893_s0 + $0x188] sm:$0xff] }
  0x1b   :  { %296 = vst [vmem:[%s896_s3 + $0x90] sm:$0xff] %v232_v35  ;;  %v117_v11 = vmul.f32 %v374_v1, %v49_v62  ;;  %v242_v13 = vmax.f32 %v178_v60, 0.0  ;;  %v182_v14 = vadd.f32 %v379_v2, %v114_v61  ;;  %v118_v15 = vmul.f32 %v374_v1, %v50_v4  ;;  %v64_v60 = vld [vmem:[%s893_s0 + $0x190] sm:$0xff] }
  0x1c   :  { %297 = vst [vmem:[%s896_s3 + $0x98] sm:$0xff] %v233_v39  ;;  %v243_v17 = vmax.f32 %v179_v0, 0.0  ;;  %v183_v18 = vadd.f32 %v379_v2, %v115_v3  ;;  %v119_v19 = vmul.f32 %v374_v1, %v51_v8  ;;  %v244_v21 = vmax.f32 %v180_v6, 0.0  ;;  %v65_v0 = vld [vmem:[%s893_s0 + $0x198] sm:$0xff] }
  0x1d   :  { %298 = vst [vmem:[%s896_s3 + $0xa0] sm:$0xff] %v234_v43  ;;  %v184_v22 = vadd.f32 %v379_v2, %v116_v7  ;;  %v120_v23 = vmul.f32 %v374_v1, %v52_v12  ;;  %v245_v25 = vmax.f32 %v181_v10, 0.0  ;;  %v185_v26 = vadd.f32 %v379_v2, %v117_v11  ;;  %v77_v3 = vld [vmem:[%s893_s0 + $0x1f8] sm:$0xff]  ;;  %v66_v7 = vld [vmem:[%s893_s0 + $0x1a0] sm:$0xff]  ;;  %v67_v11 = vld [vmem:[%s893_s0 + $0x1a8] sm:$0xff] }
  0x1e   :  { %299 = vst [vmem:[%s896_s3 + $0xa8] sm:$0xff] %v235_v47  ;;  %v121_v27 = vmul.f32 %v374_v1, %v53_v16  ;;  %v246_v29 = vmax.f32 %v182_v14, 0.0  ;;  %v186_v30 = vadd.f32 %v379_v2, %v118_v15  ;;  %v122_v31 = vmul.f32 %v374_v1, %v54_v20  ;;  %v68_v15 = vld [vmem:[%s893_s0 + $0x1b0] sm:$0xff]  ;;  %v69_v20 = vld [vmem:[%s893_s0 + $0x1b8] sm:$0xff] }
  0x1f   :  { %300 = vst [vmem:[%s896_s3 + $0xb0] sm:$0xff] %v236_v51  ;;  %v247_v33 = vmax.f32 %v183_v18, 0.0  ;;  %v187_v34 = vadd.f32 %v379_v2, %v119_v19  ;;  %v123_v35 = vmul.f32 %v374_v1, %v55_v24  ;;  %v248_v37 = vmax.f32 %v184_v22, 0.0  ;;  %v70_v24 = vld [vmem:[%s893_s0 + $0x1c0] sm:$0xff] }
  0x20   :  { %301 = vst [vmem:[%s896_s3 + $0xb8] sm:$0xff] %v237_v55  ;;  %v188_v38 = vadd.f32 %v379_v2, %v120_v23  ;;  %v124_v39 = vmul.f32 %v374_v1, %v56_v28  ;;  %v249_v41 = vmax.f32 %v185_v26, 0.0  ;;  %v189_v42 = vadd.f32 %v379_v2, %v121_v27 }
  0x21   :  { %302 = vst [vmem:[%s896_s3 + $0xc0] sm:$0xff] %v238_v59  ;;  %v125_v43 = vmul.f32 %v374_v1, %v57_v32  ;;  %v250_v45 = vmax.f32 %v186_v30, 0.0  ;;  %v190_v46 = vadd.f32 %v379_v2, %v122_v31  ;;  %v126_v47 = vmul.f32 %v374_v1, %v58_v36 }
  0x22   :  { %303 = vst [vmem:[%s896_s3 + $0xc8] sm:$0xff] %v239_v63  ;;  %v251_v49 = vmax.f32 %v187_v34, 0.0  ;;  %v191_v50 = vadd.f32 %v379_v2, %v123_v35  ;;  %v127_v51 = vmul.f32 %v374_v1, %v59_v40  ;;  %v252_v53 = vmax.f32 %v188_v38, 0.0 }
  0x23   :  { %304 = vst [vmem:[%s896_s3 + $0xd0] sm:$0xff] %v240_v5  ;;  %v192_v54 = vadd.f32 %v379_v2, %v124_v39  ;;  %v128_v55 = vmul.f32 %v374_v1, %v60_v44  ;;  %v253_v57 = vmax.f32 %v189_v42, 0.0  ;;  %v193_v58 = vadd.f32 %v379_v2, %v125_v43 }
  0x24   :  { %305 = vst [vmem:[%s896_s3 + $0xd8] sm:$0xff] %v241_v9  ;;  %v129_v59 = vmul.f32 %v374_v1, %v61_v48  ;;  %v254_v61 = vmax.f32 %v190_v46, 0.0  ;;  %v194_v62 = vadd.f32 %v379_v2, %v126_v47  ;;  %v130_v63 = vmul.f32 %v374_v1, %v62_v52 }
  0x25   :  { %306 = vst [vmem:[%s896_s3 + $0xe0] sm:$0xff] %v242_v13  ;;  %v255_v4 = vmax.f32 %v191_v50, 0.0  ;;  %v195_v5 = vadd.f32 %v379_v2, %v127_v51  ;;  %v131_v6 = vmul.f32 %v374_v1, %v63_v56  ;;  %v256_v8 = vmax.f32 %v192_v54, 0.0 }
  0x26   :  { %307 = vst [vmem:[%s896_s3 + $0xe8] sm:$0xff] %v243_v17  ;;  %v196_v9 = vadd.f32 %v379_v2, %v128_v55  ;;  %v132_v10 = vmul.f32 %v374_v1, %v64_v60  ;;  %v257_v12 = vmax.f32 %v193_v58, 0.0  ;;  %v197_v13 = vadd.f32 %v379_v2, %v129_v59 }
  0x27   :  { %308 = vst [vmem:[%s896_s3 + $0xf0] sm:$0xff] %v244_v21  ;;  %v133_v14 = vmul.f32 %v374_v1, %v65_v0  ;;  %v145_v16 = vmul.f32 %v374_v1, %v77_v3  ;;  %v258_v17 = vmax.f32 %v194_v62, 0.0  ;;  %v198_v18 = vadd.f32 %v379_v2, %v130_v63 }
  0x28   :  { %309 = vst [vmem:[%s896_s3 + $0xf8] sm:$0xff] %v245_v25  ;;  %v134_v19 = vmul.f32 %v374_v1, %v66_v7  ;;  %v259_v21 = vmax.f32 %v195_v5, 0.0  ;;  %v199_v22 = vadd.f32 %v379_v2, %v131_v6  ;;  %v135_v23 = vmul.f32 %v374_v1, %v67_v11 }
  0x29   :  { %310 = vst [vmem:[%s896_s3 + $0x100] sm:$0xff] %v246_v29  ;;  %v784_v25 = vadd.f32 %v379_v2, %v145_v16  ;;  %v260_v26 = vmax.f32 %v196_v9, 0.0  ;;  %v200_v27 = vadd.f32 %v379_v2, %v132_v10  ;;  %v136_v28 = vmul.f32 %v374_v1, %v68_v15  ;;  %v71_v29 = vld [vmem:[%s893_s0 + $0x1c8] sm:$0xff] }
  0x2a   :  { %311 = vst [vmem:[%s896_s3 + $0x108] sm:$0xff] %v247_v33  ;;  %v261_v30 = vmax.f32 %v197_v13, 0.0  ;;  %v201_v31 = vadd.f32 %v379_v2, %v133_v14  ;;  %v137_v32 = vmul.f32 %v374_v1, %v69_v20  ;;  %v72_v33 = vld [vmem:[%s893_s0 + $0x1d0] sm:$0xff]  ;;  %v262_v34 = vmax.f32 %v198_v18, 0.0 }
  0x2b   :  { %312 = vst [vmem:[%s896_s3 + $0x110] sm:$0xff] %v248_v37  ;;  %v202_v35 = vadd.f32 %v379_v2, %v134_v19  ;;  %v138_v36 = vmul.f32 %v374_v1, %v70_v24  ;;  %v73_v37 = vld [vmem:[%s893_s0 + $0x1d8] sm:$0xff]  ;;  %v263_v38 = vmax.f32 %v199_v22, 0.0  ;;  %v203_v39 = vadd.f32 %v379_v2, %v135_v23 }
  0x2c   :  { %313 = vst [vmem:[%s896_s3 + $0x118] sm:$0xff] %v249_v41  ;;  %v139_v40 = vmul.f32 %v374_v1, %v71_v29  ;;  %v74_v41 = vld [vmem:[%s893_s0 + $0x1e0] sm:$0xff]  ;;  %v264_v42 = vmax.f32 %v200_v27, 0.0  ;;  %v204_v43 = vadd.f32 %v379_v2, %v136_v28  ;;  %v140_v44 = vmul.f32 %v374_v1, %v72_v33 }
  0x2d   :  { %314 = vst [vmem:[%s896_s3 + $0x120] sm:$0xff] %v250_v45  ;;  %v75_v45 = vld [vmem:[%s893_s0 + $0x1e8] sm:$0xff]  ;;  %v265_v46 = vmax.f32 %v201_v31, 0.0  ;;  %v205_v47 = vadd.f32 %v379_v2, %v137_v32  ;;  %v141_v48 = vmul.f32 %v374_v1, %v73_v37  ;;  %v266_v50 = vmax.f32 %v202_v35, 0.0 }
  0x2e   :  { %315 = vst [vmem:[%s896_s3 + $0x128] sm:$0xff] %v251_v49  ;;  %v76_v49 = vld [vmem:[%s893_s0 + $0x1f0] sm:$0xff]  ;;  %v206_v51 = vadd.f32 %v379_v2, %v138_v36  ;;  %v142_v52 = vmul.f32 %v374_v1, %v74_v41  ;;  %v207_v54 = vadd.f32 %v379_v2, %v139_v40  ;;  %v143_v55 = vmul.f32 %v374_v1, %v75_v45 }
  0x2f   :  { %316 = vst [vmem:[%s896_s3 + $0x130] sm:$0xff] %v252_v53  ;;  %v267_v53 = vmax.f32 %v203_v39, 0.0  ;;  %v268_v56 = vmax.f32 %v204_v43, 0.0  ;;  %v144_v58 = vmul.f32 %v374_v1, %v76_v49  ;;  %v269_v59 = vmax.f32 %v205_v47, 0.0 }
  0x30   :  { %317 = vst [vmem:[%s896_s3 + $0x138] sm:$0xff] %v253_v57  ;;  %v208_v57 = vadd.f32 %v379_v2, %v140_v44  ;;  %v209_v60 = vadd.f32 %v379_v2, %v141_v48  ;;  %v210_v62 = vadd.f32 %v379_v2, %v142_v52  ;;  %v271_v63 = vmax.f32 %v207_v54, 0.0 }
  0x31   :  { %318 = vst [vmem:[%s896_s3 + $0x140] sm:$0xff] %v254_v61  ;;  %v270_v61 = vmax.f32 %v206_v51, 0.0  ;;  %v211_v1 = vadd.f32 %v379_v2, %v143_v55  ;;  %v212_v3 = vadd.f32 %v379_v2, %v144_v58  ;;  %v277_v7 = vmax.f32 %v784_v25, 0.0 }
  0x32   :  { %319 = vst [vmem:[%s896_s3 + $0x148] sm:$0xff] %v255_v4  ;;  %v272_v0 = vmax.f32 %v208_v57, 0.0  ;;  %v273_v4 = vmax.f32 %v209_v60, 0.0  ;;  %v274_v5 = vmax.f32 %v210_v62, 0.0 }
  0x33   :  { %320 = vst [vmem:[%s896_s3 + $0x150] sm:$0xff] %v256_v8  ;;  %v275_v6 = vmax.f32 %v211_v1, 0.0  ;;  %v276_v2 = vmax.f32 %v212_v3, 0.0 }
  0x34   :  { %321 = vst [vmem:[%s896_s3 + $0x158] sm:$0xff] %v257_v12 }
  0x35   :  { %322 = vst [vmem:[%s896_s3 + $0x160] sm:$0xff] %v258_v17 }
  0x36   :  { %323 = vst [vmem:[%s896_s3 + $0x168] sm:$0xff] %v259_v21 }
  0x37   :  { %324 = vst [vmem:[%s896_s3 + $0x170] sm:$0xff] %v260_v26 }
  0x38   :  { %325 = vst [vmem:[%s896_s3 + $0x178] sm:$0xff] %v261_v30 }
  0x39   :  { %326 = vst [vmem:[%s896_s3 + $0x180] sm:$0xff] %v262_v34 }
  0x3a   :  { %327 = vst [vmem:[%s896_s3 + $0x188] sm:$0xff] %v263_v38 }
  0x3b   :  { %328 = vst [vmem:[%s896_s3 + $0x190] sm:$0xff] %v264_v42 }
  0x3c   :  { %329 = vst [vmem:[%s896_s3 + $0x198] sm:$0xff] %v265_v46 }
  0x3d   :  { %330 = vst [vmem:[%s896_s3 + $0x1a0] sm:$0xff] %v266_v50 }
  0x3e   :  { %331 = vst [vmem:[%s896_s3 + $0x1a8] sm:$0xff] %v267_v53 }
  0x3f   :  { %332 = vst [vmem:[%s896_s3 + $0x1b0] sm:$0xff] %v268_v56 }
  0x40   :  { %333 = vst [vmem:[%s896_s3 + $0x1b8] sm:$0xff] %v269_v59 }
  0x41   :  { %334 = vst [vmem:[%s896_s3 + $0x1c0] sm:$0xff] %v270_v61 }
  0x42   :  { %335 = vst [vmem:[%s896_s3 + $0x1c8] sm:$0xff] %v271_v63 }
  0x43   :  { %336 = vst [vmem:[%s896_s3 + $0x1d0] sm:$0xff] %v272_v0 }
  0x44   :  { %337 = vst [vmem:[%s896_s3 + $0x1d8] sm:$0xff] %v273_v4 }
  0x45   :  { %338 = vst [vmem:[%s896_s3 + $0x1e0] sm:$0xff] %v274_v5 }
  0x46   :  { %339 = vst [vmem:[%s896_s3 + $0x1e8] sm:$0xff] %v275_v6 }
  0x47   :  { %340 = vst [vmem:[%s896_s3 + $0x1f0] sm:$0xff] %v276_v2 }
  0x48   :  { %341 = vst [vmem:[%s896_s3 + $0x1f8] sm:$0xff] %v277_v7 }

// kernel: dilated_conv_forward.2
= control target key start
LH: loop header
LB: loop body
LE: loop exit
PB: predicated region body
PF: predicated region fallthrough
CT: control target
= control target key end

     0   :  { %vm276_vm0 = vcmask 1043456   ;;  %vm83_vm1 = vcmask 293888   ;;  %s1625_s1 = inlined_call_operand.vmem [shape: f32[36,128], index: 1, kind: input, shape index: {}]   ;;  %s1626_s0 = inlined_call_operand.vmem [shape: f32[512,36], index: 0, kind: input, shape index: {}]   ;;  %s1627_s2 = inlined_call_operand.vmem [shape: f32[512,128], index: 2, kind: output, shape index: {0}]   ;;  %s1628_s3 = inlined_call_operand.vmem [shape: f32[1,1,128], index: 3, kind: output, shape index: {1}]   ;;  %s1629_s4 = inlined_call_operand.vmem [shape: f32[1,1,128], index: 4, kind: output, shape index: {2}]  }
   0x1   :  { %v82_v0 = vld [vmem:[%s1625_s1 + $0x20] sm:$0xf]  ;;  %v81_v1 = vld [vmem:[%s1625_s1 + $0x18] sm:$0xff]  ;;  %v80_v2 = vld [vmem:[%s1625_s1 + $0x10] sm:$0xff] }
   0x2   :  { %769 = vmatpush.msk.msra.mxu0 %vm276_vm0, %v82_v0  ;;  %834 = vmatpush.msk.msra.mxu1 %vm276_vm0, %v82_v0  ;;  %v79_v3 = vld [vmem:[%s1625_s1 + $0x8] sm:$0xff]  ;;  %v78_v4 = vld [vmem:[%s1625_s1] sm:$0xff]  ;;  %v16_v9 = vld [vmem:[%s1626_s0 + $0x10] sm:$0xff] }
   0x3   :  { %835 = vmatpush.msk.msra.mxu2 %vm276_vm0, %v82_v0  ;;  %836 = vmatpush.msk.msra.mxu3 %vm276_vm0, %v82_v0  ;;  %v14_v5 = vld [vmem:[%s1626_s0] sm:$0xff]  ;;  %v15_v7 = vld [vmem:[%s1626_s0 + $0x8] sm:$0xff]  ;;  %v32_v10 = vld [vmem:[%s1626_s0 + $0x90] sm:$0xff] }
   0x4   :  { %292 = vmatpush.msra.mxu0 %v81_v1  ;;  %837 = vmatpush.msra.mxu1 %v81_v1  ;;  %v30_v6 = vld [vmem:[%s1626_s0 + $0x80] sm:$0xff]  ;;  %v31_v8 = vld [vmem:[%s1626_s0 + $0x88] sm:$0xff]  ;;  %v17_v11 = vld [vmem:[%s1626_s0 + $0x18] sm:$0xff] }
   0x5   :  { %838 = vmatpush.msra.mxu2 %v81_v1  ;;  %839 = vmatpush.msra.mxu3 %v81_v1  ;;  %v33_v12 = vld [vmem:[%s1626_s0 + $0x98] sm:$0xff]  ;;  %v46_v13 = vld [vmem:[%s1626_s0 + $0x100] sm:$0xff]  ;;  %v47_v16 = vld [vmem:[%s1626_s0 + $0x108] sm:$0xff] }
   0x6   :  { %293 = vmatpush.msra.mxu0 %v80_v2  ;;  %840 = vmatpush.msra.mxu1 %v80_v2  ;;  %v18_v14 = vld [vmem:[%s1626_s0 + $0x20] sm:$0xff]  ;;  %v19_v17 = vld [vmem:[%s1626_s0 + $0x28] sm:$0xff]  ;;  %v48_v19 = vld [vmem:[%s1626_s0 + $0x110] sm:$0xff] }
   0x7   :  { %841 = vmatpush.msra.mxu2 %v80_v2  ;;  %842 = vmatpush.msra.mxu3 %v80_v2  ;;  %v34_v15 = vld [vmem:[%s1626_s0 + $0xa0] sm:$0xff]  ;;  %v35_v18 = vld [vmem:[%s1626_s0 + $0xa8] sm:$0xff]  ;;  %v20_v20 = vld [vmem:[%s1626_s0 + $0x30] sm:$0xff] }
   0x8   :  { %294 = vmatpush.msra.mxu0 %v79_v3  ;;  %843 = vmatpush.msra.mxu1 %v79_v3  ;;  %v36_v21 = vld [vmem:[%s1626_s0 + $0xb0] sm:$0xff]  ;;  %v49_v22 = vld [vmem:[%s1626_s0 + $0x118] sm:$0xff]  ;;  %v50_v25 = vld [vmem:[%s1626_s0 + $0x120] sm:$0xff] }
   0x9   :  { %844 = vmatpush.msra.mxu2 %v79_v3  ;;  %845 = vmatpush.msra.mxu3 %v79_v3  ;;  %v21_v23 = vld [vmem:[%s1626_s0 + $0x38] sm:$0xff]  ;;  %v62_v26 = vld [vmem:[%s1626_s0 + $0x180] sm:$0xff]  ;;  %v51_v29 = vld [vmem:[%s1626_s0 + $0x128] sm:$0xff] }
   0xa   :  { %295 = vmatpush.msra.mxu0 %v78_v4  ;;  %846 = vmatpush.msra.mxu1 %v78_v4  ;;  %v37_v24 = vld [vmem:[%s1626_s0 + $0xb8] sm:$0xff]  ;;  %v22_v27 = vld [vmem:[%s1626_s0 + $0x40] sm:$0xff]  ;;  %v63_v30 = vld [vmem:[%s1626_s0 + $0x188] sm:$0xff] }
   0xb   :  { %770 = vmatmul.msk.f32.vlgmr.msra.gmra.mxu0 %vm83_vm1, %v14_v5  ;;  %786 = vmatmul.msk.f32.vlgmr.msra.gmra.mxu1 %vm83_vm1, %v30_v6  ;;  %v38_v28 = vld [vmem:[%s1626_s0 + $0xc0] sm:$0xff]  ;;  %v23_v31 = vld [vmem:[%s1626_s0 + $0x48] sm:$0xff]  ;;  %v52_v33 = vld [vmem:[%s1626_s0 + $0x130] sm:$0xff] }
   0xc   :  { %847 = vmatpush.msra.mxu2 %v78_v4  ;;  %848 = vmatpush.msra.mxu3 %v78_v4  ;;  %v39_v32 = vld [vmem:[%s1626_s0 + $0xc8] sm:$0xff]  ;;  %v64_v34 = vld [vmem:[%s1626_s0 + $0x190] sm:$0xff]  ;;  %v53_v37 = vld [vmem:[%s1626_s0 + $0x138] sm:$0xff] }
   0xd   :  { %802 = vmatmul.msk.f32.vlgmr.msra.gmra.mxu2 %vm83_vm1, %v46_v13  ;;  %818 = vmatmul.msk.f32.vlgmr.msra.gmra.mxu3 %vm83_vm1, %v62_v26  ;;  %v24_v35 = vld [vmem:[%s1626_s0 + $0x50] sm:$0xff]  ;;  %v65_v38 = vld [vmem:[%s1626_s0 + $0x198] sm:$0xff]  ;;  %v54_v41 = vld [vmem:[%s1626_s0 + $0x140] sm:$0xff] }
   0xe   :  { %v40_v36 = vld [vmem:[%s1626_s0 + $0xd0] sm:$0xff]  ;;  %v25_v39 = vld [vmem:[%s1626_s0 + $0x58] sm:$0xff]  ;;  %v66_v42 = vld [vmem:[%s1626_s0 + $0x1a0] sm:$0xff] }
   0xf   :  { %v41_v40 = vld [vmem:[%s1626_s0 + $0xd8] sm:$0xff]  ;;  %v26_v43 = vld [vmem:[%s1626_s0 + $0x60] sm:$0xff]  ;;  %v55_v45 = vld [vmem:[%s1626_s0 + $0x148] sm:$0xff] }
  0x10   :  { %v42_v44 = vld [vmem:[%s1626_s0 + $0xe0] sm:$0xff]  ;;  %v67_v46 = vld [vmem:[%s1626_s0 + $0x1a8] sm:$0xff]  ;;  %v56_v49 = vld [vmem:[%s1626_s0 + $0x150] sm:$0xff] }
  0x11   :  { %v27_v47 = vld [vmem:[%s1626_s0 + $0x68] sm:$0xff]  ;;  %v68_v50 = vld [vmem:[%s1626_s0 + $0x1b0] sm:$0xff]  ;;  %v57_v53 = vld [vmem:[%s1626_s0 + $0x158] sm:$0xff] }
  0x12   :  { %v43_v48 = vld [vmem:[%s1626_s0 + $0xe8] sm:$0xff]  ;;  %v28_v51 = vld [vmem:[%s1626_s0 + $0x70] sm:$0xff]  ;;  %v69_v54 = vld [vmem:[%s1626_s0 + $0x1b8] sm:$0xff] }
  0x13   :  { %771 = vmatmul.msk.f32.gmra.mxu0 %vm83_vm1, %v15_v7  ;;  %787 = vmatmul.msk.f32.gmra.mxu1 %vm83_vm1, %v31_v8  ;;  %v44_v52 = vld [vmem:[%s1626_s0 + $0xf0] sm:$0xff]  ;;  %v29_v55 = vld [vmem:[%s1626_s0 + $0x78] sm:$0xff]  ;;  %v58_v57 = vld [vmem:[%s1626_s0 + $0x160] sm:$0xff] }
  0x14   :  { %v45_v56 = vld [vmem:[%s1626_s0 + $0xf8] sm:$0xff]  ;;  %v70_v58 = vld [vmem:[%s1626_s0 + $0x1c0] sm:$0xff]  ;;  %v59_v61 = vld [vmem:[%s1626_s0 + $0x168] sm:$0xff] }
  0x15   :  { %803 = vmatmul.msk.f32.gmra.mxu2 %vm83_vm1, %v47_v16  ;;  %819 = vmatmul.msk.f32.gmra.mxu3 %vm83_vm1, %v63_v30  ;;  %v71_v62 = vld [vmem:[%s1626_s0 + $0x1c8] sm:$0xff]  ;;  %v60_v5 = vld [vmem:[%s1626_s0 + $0x170] sm:$0xff]  ;;  %v73_v13 = vld [vmem:[%s1626_s0 + $0x1d8] sm:$0xff] }
  0x16   :  { %v72_v6 = vld [vmem:[%s1626_s0 + $0x1d0] sm:$0xff]  ;;  %v75_v26 = vld [vmem:[%s1626_s0 + $0x1e8] sm:$0xff] }
  0x17   :  { %v76_v30 = vld [vmem:[%s1626_s0 + $0x1f0] sm:$0xff] }
  0x1b   :  { %772 = vmatmul.msk.f32.gmra.mxu0 %vm83_vm1, %v16_v9  ;;  %788 = vmatmul.msk.f32.gmra.mxu1 %vm83_vm1, %v32_v10 }
  0x1d   :  { %804 = vmatmul.msk.f32.gmra.mxu2 %vm83_vm1, %v48_v19  ;;  %820 = vmatmul.msk.f32.gmra.mxu3 %vm83_vm1, %v64_v34  ;;  %v74_v19 = vld [vmem:[%s1626_s0 + $0x1e0] sm:$0xff]  ;;  %v77_v34 = vld [vmem:[%s1626_s0 + $0x1f8] sm:$0xff] }
  0x23   :  { %773 = vmatmul.msk.f32.gmra.mxu0 %vm83_vm1, %v17_v11  ;;  %789 = vmatmul.msk.f32.gmra.mxu1 %vm83_vm1, %v33_v12  ;;  %v61_v12 = vld [vmem:[%s1626_s0 + $0x178] sm:$0xff] }
  0x25   :  { %805 = vmatmul.msk.f32.gmra.mxu2 %vm83_vm1, %v49_v22  ;;  %821 = vmatmul.msk.f32.gmra.mxu3 %vm83_vm1, %v65_v38 }
  0x2b   :  { %774 = vmatmul.msk.f32.gmra.mxu0 %vm83_vm1, %v18_v14  ;;  %790 = vmatmul.msk.f32.gmra.mxu1 %vm83_vm1, %v34_v15 }
  0x2d   :  { %806 = vmatmul.msk.f32.gmra.mxu2 %vm83_vm1, %v50_v25  ;;  %822 = vmatmul.msk.f32.gmra.mxu3 %vm83_vm1, %v66_v42 }
  0x33   :  { %775 = vmatmul.msk.f32.gmra.mxu0 %vm83_vm1, %v19_v17  ;;  %791 = vmatmul.msk.f32.gmra.mxu1 %vm83_vm1, %v35_v18 }
  0x35   :  { %807 = vmatmul.msk.f32.gmra.mxu2 %vm83_vm1, %v51_v29  ;;  %823 = vmatmul.msk.f32.gmra.mxu3 %vm83_vm1, %v67_v46 }
  0x3b   :  { %776 = vmatmul.msk.f32.gmra.mxu0 %vm83_vm1, %v20_v20  ;;  %792 = vmatmul.msk.f32.gmra.mxu1 %vm83_vm1, %v36_v21 }
  0x3d   :  { %808 = vmatmul.msk.f32.gmra.mxu2 %vm83_vm1, %v52_v33  ;;  %824 = vmatmul.msk.f32.gmra.mxu3 %vm83_vm1, %v68_v50 }
  0x43   :  { %777 = vmatmul.msk.f32.gmra.mxu0 %vm83_vm1, %v21_v23  ;;  %793 = vmatmul.msk.f32.gmra.mxu1 %vm83_vm1, %v37_v24 }
  0x45   :  { %809 = vmatmul.msk.f32.gmra.mxu2 %vm83_vm1, %v53_v37  ;;  %825 = vmatmul.msk.f32.gmra.mxu3 %vm83_vm1, %v69_v54 }
  0x4b   :  { %778 = vmatmul.msk.f32.gmra.mxu0 %vm83_vm1, %v22_v27  ;;  %794 = vmatmul.msk.f32.gmra.mxu1 %vm83_vm1, %v38_v28 }
  0x4d   :  { %810 = vmatmul.msk.f32.gmra.mxu2 %vm83_vm1, %v54_v41  ;;  %826 = vmatmul.msk.f32.gmra.mxu3 %vm83_vm1, %v70_v58 }
  0x53   :  { %779 = vmatmul.msk.f32.gmra.mxu0 %vm83_vm1, %v23_v31  ;;  %795 = vmatmul.msk.f32.gmra.mxu1 %vm83_vm1, %v39_v32 }
  0x55   :  { %811 = vmatmul.msk.f32.gmra.mxu2 %vm83_vm1, %v55_v45  ;;  %827 = vmatmul.msk.f32.gmra.mxu3 %vm83_vm1, %v71_v62 }
  0x5b   :  { %780 = vmatmul.msk.f32.gmra.mxu0 %vm83_vm1, %v24_v35  ;;  %796 = vmatmul.msk.f32.gmra.mxu1 %vm83_vm1, %v40_v36 }
  0x5d   :  { %812 = vmatmul.msk.f32.gmra.mxu2 %vm83_vm1, %v56_v49  ;;  %828 = vmatmul.msk.f32.gmra.mxu3 %vm83_vm1, %v72_v6 }
  0x63   :  { %781 = vmatmul.msk.f32.gmra.mxu0 %vm83_vm1, %v25_v39  ;;  %797 = vmatmul.msk.f32.gmra.mxu1 %vm83_vm1, %v41_v40 }
  0x65   :  { %813 = vmatmul.msk.f32.gmra.mxu2 %vm83_vm1, %v57_v53  ;;  %829 = vmatmul.msk.f32.gmra.mxu3 %vm83_vm1, %v73_v13 }
  0x6b   :  { %782 = vmatmul.msk.f32.gmra.mxu0 %vm83_vm1, %v26_v43  ;;  %798 = vmatmul.msk.f32.gmra.mxu1 %vm83_vm1, %v42_v44 }
  0x6d   :  { %814 = vmatmul.msk.f32.gmra.mxu2 %vm83_vm1, %v58_v57  ;;  %830 = vmatmul.msk.f32.gmra.mxu3 %vm83_vm1, %v74_v19 }
  0x73   :  { %783 = vmatmul.msk.f32.gmra.mxu0 %vm83_vm1, %v27_v47  ;;  %799 = vmatmul.msk.f32.gmra.mxu1 %vm83_vm1, %v43_v48 }
  0x75   :  { %815 = vmatmul.msk.f32.gmra.mxu2 %vm83_vm1, %v59_v61  ;;  %831 = vmatmul.msk.f32.gmra.mxu3 %vm83_vm1, %v75_v26 }
  0x7b   :  { %784 = vmatmul.msk.f32.gmra.mxu0 %vm83_vm1, %v28_v51  ;;  %800 = vmatmul.msk.f32.gmra.mxu1 %vm83_vm1, %v44_v52 }
  0x7d   :  { %816 = vmatmul.msk.f32.gmra.mxu2 %vm83_vm1, %v60_v5  ;;  %832 = vmatmul.msk.f32.gmra.mxu3 %vm83_vm1, %v76_v30 }
  0x83   :  { %785 = vmatmul.msk.f32.gmra.mxu0 %vm83_vm1, %v29_v55  ;;  %801 = vmatmul.msk.f32.gmra.mxu1 %vm83_vm1, %v45_v56 }
  0x85   :  { %817 = vmatmul.msk.f32.gmra.mxu2 %vm83_vm1, %v61_v12  ;;  %833 = vmatmul.msk.f32.gmra.mxu3 %vm83_vm1, %v77_v34 }
  0x88   :  { %v297_v59 = vpop.f32.mrf.mxu0  ;;  %v1105_v60 = vpop.f32.mrf.mxu1 }
  0x89   :  { %489 = vst [vmem:[%s1627_s2] sm:$0xff] %v297_v59  ;;  %v622_v1 = vmul.f32 %v297_v59, %v297_v59 }
  0x8a   :  { %505 = vst [vmem:[%s1627_s2 + $0x80] sm:$0xff] %v1105_v60 }
  0x90   :  { %v300_v63 = vpop.f32.mrf.mxu0  ;;  %v1122_v0 = vpop.f32.mrf.mxu1 }
  0x91   :  { %490 = vst [vmem:[%s1627_s2 + $0x8] sm:$0xff] %v300_v63  ;;  %v553_v2 = vadd.f32 %v300_v63, %v297_v59  ;;  %v623_v3 = vmul.f32 %v300_v63, %v300_v63  ;;  %v1176_v24 = vpop.f32.mrf.mxu2  ;;  %v1255_v41 = vpop.f32.mrf.mxu3 }
  0x92   :  { %506 = vst [vmem:[%s1627_s2 + $0x88] sm:$0xff] %v1122_v0 }
  0x93   :  { %v686_v4 = vadd.f32 %v623_v3, %v622_v1  ;;  %521 = vst [vmem:[%s1627_s2 + $0x100] sm:$0xff] %v1176_v24 }
  0x94   :  { %537 = vst [vmem:[%s1627_s2 + $0x180] sm:$0xff] %v1255_v41 }
  0x98   :  { %v303_v7 = vpop.f32.mrf.mxu0  ;;  %v1139_v8 = vpop.f32.mrf.mxu1 }
  0x99   :  { %491 = vst [vmem:[%s1627_s2 + $0x10] sm:$0xff] %v303_v7  ;;  %v554_v9 = vadd.f32 %v553_v2, %v303_v7  ;;  %v624_v10 = vmul.f32 %v303_v7, %v303_v7  ;;  %v1200_v29 = vpop.f32.mrf.mxu2  ;;  %v1276_v45 = vpop.f32.mrf.mxu3 }
  0x9a   :  { %507 = vst [vmem:[%s1627_s2 + $0x90] sm:$0xff] %v1139_v8 }
  0x9b   :  { %v687_v11 = vadd.f32 %v686_v4, %v624_v10  ;;  %522 = vst [vmem:[%s1627_s2 + $0x108] sm:$0xff] %v1200_v29 }
  0x9c   :  { %538 = vst [vmem:[%s1627_s2 + $0x188] sm:$0xff] %v1276_v45 }
  0xa0   :  { %v306_v14 = vpop.f32.mrf.mxu0  ;;  %v1156_v15 = vpop.f32.mrf.mxu1 }
  0xa1   :  { %492 = vst [vmem:[%s1627_s2 + $0x18] sm:$0xff] %v306_v14  ;;  %v555_v16 = vadd.f32 %v554_v9, %v306_v14  ;;  %v625_v17 = vmul.f32 %v306_v14, %v306_v14  ;;  %v1219_v33 = vpop.f32.mrf.mxu2  ;;  %v1297_v49 = vpop.f32.mrf.mxu3 }
  0xa2   :  { %508 = vst [vmem:[%s1627_s2 + $0x98] sm:$0xff] %v1156_v15 }
  0xa3   :  { %v688_v18 = vadd.f32 %v687_v11, %v625_v17  ;;  %523 = vst [vmem:[%s1627_s2 + $0x110] sm:$0xff] %v1219_v33 }
  0xa4   :  { %539 = vst [vmem:[%s1627_s2 + $0x190] sm:$0xff] %v1297_v49 }
  0xa8   :  { %v309_v20 = vpop.f32.mrf.mxu0  ;;  %v1169_v21 = vpop.f32.mrf.mxu1 }
  0xa9   :  { %493 = vst [vmem:[%s1627_s2 + $0x20] sm:$0xff] %v309_v20  ;;  %v1174_v22 = vadd.f32 %v555_v16, %v309_v20  ;;  %v626_v23 = vmul.f32 %v309_v20, %v309_v20  ;;  %v1238_v37 = vpop.f32.mrf.mxu2  ;;  %v1318_v53 = vpop.f32.mrf.mxu3 }
  0xaa   :  { %509 = vst [vmem:[%s1627_s2 + $0xa0] sm:$0xff] %v1169_v21 }
  0xab   :  { %v1182_v25 = vadd.f32 %v688_v18, %v626_v23  ;;  %524 = vst [vmem:[%s1627_s2 + $0x118] sm:$0xff] %v1238_v37 }
  0xac   :  { %540 = vst [vmem:[%s1627_s2 + $0x198] sm:$0xff] %v1318_v53 }
  0xb0   :  { %v1192_v27 = vpop.f32.mrf.mxu0  ;;  %v1194_v28 = vpop.f32.mrf.mxu1 }
  0xb1   :  { %494 = vst [vmem:[%s1627_s2 + $0x28] sm:$0xff] %v1192_v27  ;;  %v1253_v40 = vpop.f32.mrf.mxu2  ;;  %v1339_v57 = vpop.f32.mrf.mxu3  ;;  %v627_v58 = vmul.f32 %v1192_v27, %v1192_v27  ;;  %v557_v59 = vadd.f32 %v1174_v22, %v1192_v27 }
  0xb2   :  { %510 = vst [vmem:[%s1627_s2 + $0xa8] sm:$0xff] %v1194_v28 }
  0xb3   :  { %525 = vst [vmem:[%s1627_s2 + $0x120] sm:$0xff] %v1253_v40  ;;  %v690_v62 = vadd.f32 %v1182_v25, %v627_v58 }
  0xb4   :  { %541 = vst [vmem:[%s1627_s2 + $0x1a0] sm:$0xff] %v1339_v57 }
  0xb8   :  { %v315_v31 = vpop.f32.mrf.mxu0  ;;  %v1214_v32 = vpop.f32.mrf.mxu1 }
  0xb9   :  { %495 = vst [vmem:[%s1627_s2 + $0x30] sm:$0xff] %v315_v31  ;;  %v1274_v44 = vpop.f32.mrf.mxu2  ;;  %v628_v61 = vmul.f32 %v315_v31, %v315_v31  ;;  %v558_v63 = vadd.f32 %v557_v59, %v315_v31  ;;  %v1365_v9 = vpop.f32.mrf.mxu3 }
  0xba   :  { %511 = vst [vmem:[%s1627_s2 + $0xb0] sm:$0xff] %v1214_v32 }
  0xbb   :  { %526 = vst [vmem:[%s1627_s2 + $0x128] sm:$0xff] %v1274_v44  ;;  %v691_v4 = vadd.f32 %v690_v62, %v628_v61 }
  0xbc   :  { %542 = vst [vmem:[%s1627_s2 + $0x1a8] sm:$0xff] %v1365_v9 }
  0xc0   :  { %v318_v35 = vpop.f32.mrf.mxu0  ;;  %v1233_v36 = vpop.f32.mrf.mxu1 }
  0xc1   :  { %496 = vst [vmem:[%s1627_s2 + $0x38] sm:$0xff] %v318_v35  ;;  %v1295_v48 = vpop.f32.mrf.mxu2  ;;  %v629_v1 = vmul.f32 %v318_v35, %v318_v35  ;;  %v559_v5 = vadd.f32 %v558_v63, %v318_v35  ;;  %v1386_v30 = vpop.f32.mrf.mxu3 }
  0xc2   :  { %512 = vst [vmem:[%s1627_s2 + $0xb8] sm:$0xff] %v1233_v36 }
  0xc3   :  { %527 = vst [vmem:[%s1627_s2 + $0x130] sm:$0xff] %v1295_v48  ;;  %v692_v10 = vadd.f32 %v691_v4, %v629_v1 }
  0xc4   :  { %543 = vst [vmem:[%s1627_s2 + $0x1b0] sm:$0xff] %v1386_v30 }
  0xc8   :  { %v321_v38 = vpop.f32.mrf.mxu0  ;;  %v1248_v39 = vpop.f32.mrf.mxu1 }
  0xc9   :  { %497 = vst [vmem:[%s1627_s2 + $0x40] sm:$0xff] %v321_v38  ;;  %v1316_v52 = vpop.f32.mrf.mxu2  ;;  %v630_v6 = vmul.f32 %v321_v38, %v321_v38  ;;  %v560_v11 = vadd.f32 %v559_v5, %v321_v38  ;;  %v1407_v4 = vpop.f32.mrf.mxu3 }
  0xca   :  { %513 = vst [vmem:[%s1627_s2 + $0xc0] sm:$0xff] %v1248_v39 }
  0xcb   :  { %528 = vst [vmem:[%s1627_s2 + $0x138] sm:$0xff] %v1316_v52  ;;  %v693_v13 = vadd.f32 %v692_v10, %v630_v6  ;;  %v639_v10 = vmul.f32 %v1122_v0, %v1122_v0 }
  0xcc   :  { %544 = vst [vmem:[%s1627_s2 + $0x1b8] sm:$0xff] %v1407_v4 }
  0xd0   :  { %v324_v42 = vpop.f32.mrf.mxu0  ;;  %v1269_v43 = vpop.f32.mrf.mxu1 }
  0xd1   :  { %498 = vst [vmem:[%s1627_s2 + $0x48] sm:$0xff] %v324_v42  ;;  %v1337_v56 = vpop.f32.mrf.mxu2  ;;  %v631_v12 = vmul.f32 %v324_v42, %v324_v42  ;;  %v561_v14 = vadd.f32 %v560_v11, %v324_v42 }
  0xd2   :  { %514 = vst [vmem:[%s1627_s2 + $0xc8] sm:$0xff] %v1269_v43 }
  0xd3   :  { %529 = vst [vmem:[%s1627_s2 + $0x140] sm:$0xff] %v1337_v56  ;;  %v694_v17 = vadd.f32 %v693_v13, %v631_v12 }
  0xd8   :  { %v327_v46 = vpop.f32.mrf.mxu0  ;;  %v1290_v47 = vpop.f32.mrf.mxu1 }
  0xd9   :  { %499 = vst [vmem:[%s1627_s2 + $0x50] sm:$0xff] %v327_v46  ;;  %v1363_v7 = vpop.f32.mrf.mxu2  ;;  %v632_v16 = vmul.f32 %v327_v46, %v327_v46  ;;  %v562_v18 = vadd.f32 %v561_v14, %v327_v46 }
  0xda   :  { %515 = vst [vmem:[%s1627_s2 + $0xd0] sm:$0xff] %v1290_v47 }
  0xdb   :  { %530 = vst [vmem:[%s1627_s2 + $0x148] sm:$0xff] %v1363_v7  ;;  %v695_v23 = vadd.f32 %v694_v17, %v632_v16  ;;  %v641_v16 = vmul.f32 %v1156_v15, %v1156_v15 }
  0xe0   :  { %v330_v50 = vpop.f32.mrf.mxu0  ;;  %v1311_v51 = vpop.f32.mrf.mxu1 }
  0xe1   :  { %500 = vst [vmem:[%s1627_s2 + $0x58] sm:$0xff] %v330_v50  ;;  %v633_v19 = vmul.f32 %v330_v50, %v330_v50  ;;  %v563_v25 = vadd.f32 %v562_v18, %v330_v50  ;;  %v1384_v27 = vpop.f32.mrf.mxu2 }
  0xe2   :  { %516 = vst [vmem:[%s1627_s2 + $0xd8] sm:$0xff] %v1311_v51 }
  0xe3   :  { %v696_v31 = vadd.f32 %v695_v23, %v633_v19  ;;  %531 = vst [vmem:[%s1627_s2 + $0x150] sm:$0xff] %v1384_v27 }
  0xe8   :  { %v333_v54 = vpop.f32.mrf.mxu0  ;;  %v1332_v55 = vpop.f32.mrf.mxu1 }
  0xe9   :  { %501 = vst [vmem:[%s1627_s2 + $0x60] sm:$0xff] %v333_v54  ;;  %v634_v26 = vmul.f32 %v333_v54, %v333_v54  ;;  %v564_v34 = vadd.f32 %v563_v25, %v333_v54  ;;  %v1405_v1 = vpop.f32.mrf.mxu2 }
  0xea   :  { %517 = vst [vmem:[%s1627_s2 + $0xe0] sm:$0xff] %v1332_v55 }
  0xeb   :  { %v697_v38 = vadd.f32 %v696_v31, %v634_v26  ;;  %532 = vst [vmem:[%s1627_s2 + $0x158] sm:$0xff] %v1405_v1  ;;  %v644_v31 = vmul.f32 %v1214_v32, %v1214_v32 }
  0xf0   :  { %v336_v2 = vpop.f32.mrf.mxu0  ;;  %v1358_v3 = vpop.f32.mrf.mxu1 }
  0xf1   :  { %502 = vst [vmem:[%s1627_s2 + $0x68] sm:$0xff] %v336_v2  ;;  %v635_v35 = vmul.f32 %v336_v2, %v336_v2  ;;  %v565_v42 = vadd.f32 %v564_v34, %v336_v2  ;;  %v638_v2 = vmul.f32 %v1105_v60, %v1105_v60  ;;  %v1433_v19 = vpop.f32.mrf.mxu2 }
  0xf2   :  { %518 = vst [vmem:[%s1627_s2 + $0xe8] sm:$0xff] %v1358_v3 }
  0xf3   :  { %v698_v50 = vadd.f32 %v697_v38, %v635_v35  ;;  %533 = vst [vmem:[%s1627_s2 + $0x160] sm:$0xff] %v1433_v19 }
  0xf8   :  { %v339_v20 = vpop.f32.mrf.mxu0  ;;  %v1379_v22 = vpop.f32.mrf.mxu1 }
  0xf9   :  { %503 = vst [vmem:[%s1627_s2 + $0x70] sm:$0xff] %v339_v20  ;;  %v636_v46 = vmul.f32 %v339_v20, %v339_v20  ;;  %v566_v58 = vadd.f32 %v565_v42, %v339_v20  ;;  %v1435_v20 = vpop.f32.mrf.mxu3 }
  0xfa   :  { %519 = vst [vmem:[%s1627_s2 + $0xf0] sm:$0xff] %v1379_v22 }
  0xfb   :  { %v699_v54 = vadd.f32 %v698_v50, %v636_v46  ;;  %545 = vst [vmem:[%s1627_s2 + $0x1c0] sm:$0xff] %v1435_v20  ;;  %v1457_v46 = vpop.f32.mrf.mxu2 }
  0xfc   :  { %534 = vst [vmem:[%s1627_s2 + $0x168] sm:$0xff] %v1457_v46 }
 0x100   :  { %v342_v59 = vpop.f32.mrf.mxu0  ;;  %v1400_v61 = vpop.f32.mrf.mxu1 }
 0x101   :  { %504 = vst [vmem:[%s1627_s2 + $0x78] sm:$0xff] %v342_v59  ;;  %v567_v62 = vadd.f32 %v566_v58, %v342_v59  ;;  %v637_v63 = vmul.f32 %v342_v59, %v342_v59  ;;  %v1459_v50 = vpop.f32.mrf.mxu3 }
 0x102   :  { %520 = vst [vmem:[%s1627_s2 + $0xf8] sm:$0xff] %v1400_v61 }
 0x103   :  { %v568_v5 = vadd.f32 %v567_v62, %v1105_v60  ;;  %v700_v6 = vadd.f32 %v699_v54, %v637_v63  ;;  %v640_v60 = vmul.f32 %v1139_v8, %v1139_v8  ;;  %546 = vst [vmem:[%s1627_s2 + $0x1c8] sm:$0xff] %v1459_v50  ;;  %v648_v62 = vmul.f32 %v1290_v47, %v1290_v47 }
 0x105   :  { %v569_v11 = vadd.f32 %v568_v5, %v1122_v0  ;;  %v701_v12 = vadd.f32 %v700_v6, %v638_v2  ;;  %v642_v0 = vmul.f32 %v1169_v21, %v1169_v21  ;;  %v649_v5 = vmul.f32 %v1311_v51, %v1311_v51 }
 0x107   :  { %v570_v13 = vadd.f32 %v569_v11, %v1139_v8  ;;  %v702_v14 = vadd.f32 %v701_v12, %v639_v10  ;;  %v1481_v10 = vpop.f32.mrf.mxu2 }
 0x108   :  { %535 = vst [vmem:[%s1627_s2 + $0x170] sm:$0xff] %v1481_v10 }
 0x109   :  { %v571_v17 = vadd.f32 %v570_v13, %v1156_v15  ;;  %v703_v18 = vadd.f32 %v702_v14, %v640_v60  ;;  %v643_v15 = vmul.f32 %v1194_v28, %v1194_v28  ;;  %v1483_v11 = vpop.f32.mrf.mxu3  ;;  %v651_v13 = vmul.f32 %v1358_v3, %v1358_v3 }
 0x10a   :  { %547 = vst [vmem:[%s1627_s2 + $0x1d0] sm:$0xff] %v1483_v11 }
 0x10b   :  { %v572_v8 = vadd.f32 %v571_v17, %v1169_v21  ;;  %v704_v23 = vadd.f32 %v703_v18, %v641_v16  ;;  %v645_v21 = vmul.f32 %v1233_v36, %v1233_v36  ;;  %v652_v17 = vmul.f32 %v1379_v22, %v1379_v22 }
 0x10d   :  { %v573_v25 = vadd.f32 %v572_v8, %v1194_v28  ;;  %v705_v26 = vadd.f32 %v704_v23, %v642_v0  ;;  %v646_v28 = vmul.f32 %v1248_v39, %v1248_v39 }
 0x10f   :  { %v706_v34 = vadd.f32 %v705_v26, %v643_v15  ;;  %v574_v35 = vadd.f32 %v573_v25, %v1214_v32  ;;  %v438_v8 = vpop.f32.mrf.mxu2 }
 0x110   :  { %536 = vst [vmem:[%s1627_s2 + $0x178] sm:$0xff] %v438_v8 }
 0x111   :  { %v575_v38 = vadd.f32 %v574_v35, %v1233_v36  ;;  %v707_v42 = vadd.f32 %v706_v34, %v644_v31  ;;  %v647_v36 = vmul.f32 %v1269_v43, %v1269_v43  ;;  %v1505_v23 = vpop.f32.mrf.mxu3  ;;  %v656_v31 = vmul.f32 %v1219_v33, %v1219_v33 }
 0x112   :  { %548 = vst [vmem:[%s1627_s2 + $0x1d8] sm:$0xff] %v1505_v23 }
 0x113   :  { %v576_v32 = vadd.f32 %v575_v38, %v1248_v39  ;;  %v708_v58 = vadd.f32 %v707_v42, %v645_v21 }
 0x115   :  { %v577_v59 = vadd.f32 %v576_v32, %v1269_v43  ;;  %v709_v54 = vadd.f32 %v708_v58, %v646_v28  ;;  %v659_v32 = vmul.f32 %v1274_v44, %v1274_v44 }
 0x117   :  { %v578_v63 = vadd.f32 %v577_v59, %v1290_v47  ;;  %v710_v2 = vadd.f32 %v709_v54, %v647_v36  ;;  %v650_v47 = vmul.f32 %v1332_v55, %v1332_v55  ;;  %v660_v36 = vmul.f32 %v1295_v48, %v1295_v48 }
 0x119   :  { %v579_v39 = vadd.f32 %v578_v63, %v1311_v51  ;;  %v711_v6 = vadd.f32 %v710_v2, %v648_v62  ;;  %v1526_v42 = vpop.f32.mrf.mxu3  ;;  %v661_v62 = vmul.f32 %v1316_v52, %v1316_v52 }
 0x11a   :  { %549 = vst [vmem:[%s1627_s2 + $0x1e0] sm:$0xff] %v1526_v42 }
 0x11b   :  { %v712_v43 = vadd.f32 %v711_v6, %v649_v5  ;;  %v580_v12 = vadd.f32 %v579_v39, %v1332_v55  ;;  %v653_v55 = vmul.f32 %v1400_v61, %v1400_v61 }
 0x11d   :  { %v713_v51 = vadd.f32 %v712_v43, %v650_v47  ;;  %v581_v60 = vadd.f32 %v580_v12, %v1358_v3  ;;  %v654_v3 = vmul.f32 %v1176_v24, %v1176_v24  ;;  %v664_v43 = vmul.f32 %v1384_v27, %v1384_v27 }
 0x11f   :  { %v714_v14 = vadd.f32 %v713_v51, %v651_v13  ;;  %v582_v16 = vadd.f32 %v581_v60, %v1379_v22  ;;  %v655_v22 = vmul.f32 %v1200_v29, %v1200_v29  ;;  %v665_v60 = vmul.f32 %v1405_v1, %v1405_v1 }
 0x121   :  { %v715_v18 = vadd.f32 %v714_v14, %v652_v17  ;;  %v583_v0 = vadd.f32 %v582_v16, %v1400_v61  ;;  %v666_v16 = vmul.f32 %v1433_v19, %v1433_v19 }
 0x123   :  { %v584_v15 = vadd.f32 %v583_v0, %v1176_v24  ;;  %v716_v25 = vadd.f32 %v715_v18, %v653_v55  ;;  %v657_v24 = vmul.f32 %v1238_v37, %v1238_v37  ;;  %v667_v55 = vmul.f32 %v1457_v46, %v1457_v46 }
 0x124   :  { %v668_v0 = vmul.f32 %v1481_v10, %v1481_v10 }
 0x125   :  { %v585_v61 = vadd.f32 %v584_v15, %v1200_v29  ;;  %v717_v26 = vadd.f32 %v716_v25, %v654_v3  ;;  %v658_v29 = vmul.f32 %v1253_v40, %v1253_v40  ;;  %v669_v3 = vmul.f32 %v438_v8, %v438_v8 }
 0x127   :  { %v586_v34 = vadd.f32 %v585_v61, %v1219_v33  ;;  %v718_v35 = vadd.f32 %v717_v26, %v655_v22  ;;  %v671_v26 = vmul.f32 %v1276_v45, %v1276_v45 }
 0x129   :  { %v587_v21 = vadd.f32 %v586_v34, %v1238_v37  ;;  %v719_v38 = vadd.f32 %v718_v35, %v656_v31 }
 0x12b   :  { %v588_v28 = vadd.f32 %v587_v21, %v1253_v40  ;;  %v720_v33 = vadd.f32 %v719_v38, %v657_v24  ;;  %v1544_v40 = vpop.f32.mrf.mxu3  ;;  %v673_v24 = vmul.f32 %v1318_v53, %v1318_v53 }
 0x12c   :  { %550 = vst [vmem:[%s1627_s2 + $0x1e8] sm:$0xff] %v1544_v40 }
 0x12d   :  { %v589_v58 = vadd.f32 %v588_v28, %v1274_v44  ;;  %v721_v37 = vadd.f32 %v720_v33, %v658_v29  ;;  %v662_v44 = vmul.f32 %v1337_v56, %v1337_v56 }
 0x12f   :  { %v722_v59 = vadd.f32 %v721_v37, %v659_v32  ;;  %v590_v54 = vadd.f32 %v589_v58, %v1295_v48  ;;  %v663_v48 = vmul.f32 %v1363_v7, %v1363_v7 }
 0x131   :  { %v591_v63 = vadd.f32 %v590_v54, %v1316_v52  ;;  %v723_v2 = vadd.f32 %v722_v59, %v660_v36 }
 0x133   :  { %v592_v39 = vadd.f32 %v591_v63, %v1337_v56  ;;  %v724_v5 = vadd.f32 %v723_v2, %v661_v62  ;;  %v483_v56 = vpop.f32.mrf.mxu3 }
 0x134   :  { %551 = vst [vmem:[%s1627_s2 + $0x1f0] sm:$0xff] %v483_v56 }
 0x135   :  { %v593_v6 = vadd.f32 %v592_v39, %v1363_v7  ;;  %v725_v52 = vadd.f32 %v724_v5, %v662_v44  ;;  %v681_v5 = vmul.f32 %v1505_v23, %v1505_v23 }
 0x137   :  { %v594_v12 = vadd.f32 %v593_v6, %v1384_v27  ;;  %v726_v47 = vadd.f32 %v725_v52, %v663_v48  ;;  %v682_v52 = vmul.f32 %v1526_v42, %v1526_v42 }
 0x139   :  { %v595_v51 = vadd.f32 %v594_v12, %v1405_v1  ;;  %v727_v13 = vadd.f32 %v726_v47, %v664_v43  ;;  %v683_v12 = vmul.f32 %v1544_v40, %v1544_v40 }
 0x13b   :  { %v728_v14 = vadd.f32 %v727_v13, %v665_v60  ;;  %v596_v7 = vadd.f32 %v595_v51, %v1433_v19  ;;  %v486_v22 = vpop.f32.mrf.mxu3  ;;  %v670_v19 = vmul.f32 %v1255_v41, %v1255_v41  ;;  %v684_v51 = vmul.f32 %v483_v56, %v483_v56 }
 0x13c   :  { %552 = vst [vmem:[%s1627_s2 + $0x1f8] sm:$0xff] %v486_v22  ;;  %v685_v60 = vmul.f32 %v486_v22, %v486_v22 }
 0x13d   :  { %v729_v17 = vadd.f32 %v728_v14, %v666_v16  ;;  %v597_v27 = vadd.f32 %v596_v7, %v1457_v46 }
 0x13f   :  { %v730_v18 = vadd.f32 %v729_v17, %v667_v55  ;;  %v598_v1 = vadd.f32 %v597_v27, %v1481_v10 }
 0x141   :  { %v731_v15 = vadd.f32 %v730_v18, %v668_v0  ;;  %v599_v25 = vadd.f32 %v598_v1, %v438_v8  ;;  %v672_v8 = vmul.f32 %v1297_v49, %v1297_v49 }
 0x143   :  { %v600_v61 = vadd.f32 %v599_v25, %v1255_v41  ;;  %v732_v46 = vadd.f32 %v731_v15, %v669_v3  ;;  %v674_v41 = vmul.f32 %v1339_v57, %v1339_v57 }
 0x145   :  { %v601_v31 = vadd.f32 %v600_v61, %v1276_v45  ;;  %v733_v10 = vadd.f32 %v732_v46, %v670_v19  ;;  %v675_v45 = vmul.f32 %v1365_v9, %v1365_v9 }
 0x147   :  { %v602_v34 = vadd.f32 %v601_v31, %v1297_v49  ;;  %v734_v35 = vadd.f32 %v733_v10, %v671_v26  ;;  %v676_v49 = vmul.f32 %v1386_v30, %v1386_v30 }
 0x149   :  { %v603_v21 = vadd.f32 %v602_v34, %v1318_v53  ;;  %v735_v38 = vadd.f32 %v734_v35, %v672_v8  ;;  %v677_v53 = vmul.f32 %v1407_v4, %v1407_v4 }
 0x14b   :  { %v604_v29 = vadd.f32 %v603_v21, %v1339_v57  ;;  %v736_v28 = vadd.f32 %v735_v38, %v673_v24  ;;  %v678_v57 = vmul.f32 %v1435_v20, %v1435_v20 }
 0x14d   :  { %v605_v33 = vadd.f32 %v604_v29, %v1365_v9  ;;  %v737_v32 = vadd.f32 %v736_v28, %v674_v41  ;;  %v679_v9 = vmul.f32 %v1459_v50, %v1459_v50 }
 0x14f   :  { %v738_v58 = vadd.f32 %v737_v32, %v675_v45  ;;  %v606_v37 = vadd.f32 %v605_v33, %v1386_v30  ;;  %v680_v30 = vmul.f32 %v1483_v11, %v1483_v11 }
 0x151   :  { %v607_v36 = vadd.f32 %v606_v37, %v1407_v4  ;;  %v739_v59 = vadd.f32 %v738_v58, %v676_v49 }
 0x153   :  { %v608_v54 = vadd.f32 %v607_v36, %v1435_v20  ;;  %v740_v62 = vadd.f32 %v739_v59, %v677_v53 }
 0x155   :  { %v609_v63 = vadd.f32 %v608_v54, %v1459_v50  ;;  %v741_v2 = vadd.f32 %v740_v62, %v678_v57 }
 0x157   :  { %v610_v44 = vadd.f32 %v609_v63, %v1483_v11  ;;  %v742_v39 = vadd.f32 %v741_v2, %v679_v9 }
 0x159   :  { %v611_v4 = vadd.f32 %v610_v44, %v1505_v23  ;;  %v743_v48 = vadd.f32 %v742_v39, %v680_v30 }
 0x15b   :  { %v744_v20 = vadd.f32 %v743_v48, %v681_v5  ;;  %v612_v6 = vadd.f32 %v611_v4, %v1526_v42 }
 0x15d   :  { %v745_v50 = vadd.f32 %v744_v20, %v682_v52  ;;  %v613_v43 = vadd.f32 %v612_v6, %v1544_v40 }
 0x15f   :  { %v746_v11 = vadd.f32 %v745_v50, %v683_v12  ;;  %v614_v47 = vadd.f32 %v613_v43, %v483_v56 }
 0x161   :  { %v747_v13 = vadd.f32 %v746_v11, %v684_v51  ;;  %v615_v14 = vadd.f32 %v614_v47, %v486_v22 }
 0x163   :  { %v616_v23 = vrot.slane %v615_v14, 4  ;;  %v748_v7 = vadd.f32 %v747_v13, %v685_v60 }
 0x165   :  { %v617_v16 = vadd.f32 %v616_v23, %v615_v14  ;;  %v749_v17 = vrot.slane %v748_v7, 4 }
 0x167   :  { %v618_v27 = vrot.slane %v617_v16, 2  ;;  %v750_v55 = vadd.f32 %v749_v17, %v748_v7 }
 0x169   :  { %v619_v18 = vadd.f32 %v618_v27, %v617_v16  ;;  %v751_v42 = vrot.slane %v750_v55, 2 }
 0x16b   :  { %v620_v1 = vrot.slane %v619_v18, 1  ;;  %v752_v0 = vadd.f32 %v751_v42, %v750_v55 }
 0x16d   :  { %v621_v3 = vadd.f32 %v620_v1, %v619_v18  ;;  %v753_v15 = vrot.slane %v752_v0, 1 }
 0x16f   :  { %v754_v25 = vadd.f32 %v753_v15, %v752_v0  ;;  %755 = vst [vmem:[%s1628_s3] sm:$0x1] %v621_v3 }
 0x171   :  { %756 = vst [vmem:[%s1629_s4] sm:$0x1] %v754_v25 }

</bundles_post_ra>
